<compile_context>
chip_gen: v7x
topology: tpu7x:2x2x1
jax: 0.10.0
libtpu: 0.0.40
codegen_flags: <defaults>
</compile_context>

<pallas_src>
import jax
import jax.numpy as jnp
from jax.experimental import pallas as pl
from jax.experimental.pallas import tpu as pltpu


def _round_up(x, m):
    return (x + m - 1) // m * m


def actor_kernel(x_ref, w1_ref, b1_ref, w2_ref, b2_ref, w3_ref, b3_ref, o_ref):
    # One batch tile; all three matmuls fused (each layer is tiny -> launch/DMA
    # overhead would dominate if split per layer).
    x = x_ref[...]

    h1 = jnp.tanh(
        jnp.dot(x, w1_ref[...], preferred_element_type=jnp.float32) + b1_ref[...]
    )
    # Cast only the MXU operand back to the weight dtype (no-op for f32 weights,
    # bf16 MXU path when use_bf16=True); activations/transcendentals stay f32.
    h2 = jnp.tanh(
        jnp.dot(h1.astype(w2_ref.dtype), w2_ref[...],
                preferred_element_type=jnp.float32) + b2_ref[...]
    )
    logits = (
        jnp.dot(h2.astype(w3_ref.dtype), w3_ref[...],
                preferred_element_type=jnp.float32) + b3_ref[...]
    )
    o_ref[...] = jax.nn.sigmoid(logits).astype(o_ref.dtype)


def actor_forward(state, params, *, block_batch=1024, use_bf16=False):
    """Fused actor forward.

    state:  (batch, input_dim) float array.
    params: dict with w1,b1,w2,b2,w3,b3 already in (in,out)/(1,out) layout.
    block_batch: batch tile (rows per grid step) for large batches.
    use_bf16: cast state & weights (MXU operands) to bf16; accum stays f32.
    """
    state = jnp.asarray(state, jnp.float32)
    batch, input_dim = state.shape
    out_dim = params["w3"].shape[1]

    mxu_dtype = jnp.bfloat16 if use_bf16 else jnp.float32
    x = state.astype(mxu_dtype)
    w1 = params["w1"].astype(mxu_dtype)
    w2 = params["w2"].astype(mxu_dtype)
    w3 = params["w3"].astype(mxu_dtype)
    b1 = params["b1"].astype(jnp.float32)
    b2 = params["b2"].astype(jnp.float32)
    b3 = params["b3"].astype(jnp.float32)

    # Pick the batch tile: large batches use block_batch (multiple of 256 by
    # default -> MXU-M aligned on v5e/v6e/v7x); small batches become one
    # sublane-aligned (multiple of 8) tile. Pad batch up to a tile multiple.
    if batch <= block_batch:
        tb = _round_up(max(batch, 1), 8)
    else:
        tb = block_batch
    padded = _round_up(batch, tb)
    if padded != batch:
        x = jnp.pad(x, ((0, padded - batch), (0, 0)))

    grid = (padded // tb,)

    state_spec = pl.BlockSpec((tb, input_dim), lambda i: (i, 0))
    out_spec = pl.BlockSpec((tb, out_dim), lambda i: (i, 0))

    def resident(arr):
        # Full-array block with a constant index_map: weights/biases are DMA'd
        # once and stay VMEM-resident across all batch tiles.
        return pl.BlockSpec(arr.shape, lambda i: (0, 0))

    out = pl.pallas_call(
        actor_kernel,
        out_shape=jax.ShapeDtypeStruct((padded, out_dim), jnp.float32),
        grid=grid,
        in_specs=[
            state_spec,
            resident(w1), resident(b1),
            resident(w2), resident(b2),
            resident(w3), resident(b3),
        ],
        out_specs=out_spec,
        compiler_params=pltpu.CompilerParams(
            dimension_semantics=("parallel",),  # shard batch tiles across TCs (v7x)
        ),
    )(x, w1, b1, w2, b2, w3, b3)

    return out[:batch]


def init_actor_params(key, input_dim, output_dim, hidden_dim, init_w=0.003):
    """Deterministic init matching the PyTorch module:
    - linear1/linear2: uniform(-1/sqrt(fan_in), 1/sqrt(fan_in)) (nn.Linear default)
    - linear3: uniform(-init_w, init_w)
    Weights stored transposed as (in, out); biases as (1, out).
    """
    k = jax.random.split(key, 6)

    def u(key, shape, bound):
        return jax.random.uniform(key, shape, jnp.float32, -bound, bound)

    b1 = 1.0 / jnp.sqrt(float(input_dim))
    b2 = 1.0 / jnp.sqrt(float(hidden_dim[0]))
    return {
        "w1": u(k[0], (input_dim, hidden_dim[0]), b1),
        "b1": u(k[1], (1, hidden_dim[0]), b1),
        "w2": u(k[2], (hidden_dim[0], hidden_dim[1]), b2),
        "b2": u(k[3], (1, hidden_dim[1]), b2),
        "w3": u(k[4], (hidden_dim[1], output_dim), init_w),
        "b3": u(k[5], (1, output_dim), init_w),
    }


if __name__ == "__main__":
    # Shapes consistent with the module: states of dim 8, hidden_dim=[32, 32],
    # action_dim=4.
    batch, input_dim, output_dim = 2, 8, 4
    hidden_dim = [32, 32]

    key = jax.random.PRNGKey(0)
    k_state, k_params, k_big = jax.random.split(key, 3)

    params = init_actor_params(k_params, input_dim, output_dim, hidden_dim)

    def ref_forward(s, p):
        h = jnp.tanh(s @ p["w1"] + p["b1"])
        h = jnp.tanh(h @ p["w2"] + p["b2"])
        return jax.nn.sigmoid(h @ p["w3"] + p["b3"])

    # 1) Tiny batch (module-scale demo): single sublane-aligned tile, grid=(1,).
    state = jax.random.normal(k_state, (batch, input_dim), dtype=jnp.float32)
    out = jax.block_until_ready(actor_forward(state, params))
    assert out.shape == (batch, output_dim)
    assert jnp.allclose(out, ref_forward(state, params), atol=1e-5, rtol=1e-5)

    # 2) Larger batch exercising the tiled grid (padding + multiple grid steps,
    #    VMEM-resident weights).
    big_state = jax.random.normal(k_big, (300, input_dim), dtype=jnp.float32)
    out_big = jax.block_until_ready(
        actor_forward(big_state, params, block_batch=128)
    )
    assert out_big.shape == (300, output_dim)
    assert jnp.allclose(out_big, ref_forward(big_state, params),
                        atol=1e-5, rtol=1e-5)

    # 3) bf16 MXU-operand path (f32 accumulate + f32 activations): looser tol.
    out_bf16 = jax.block_until_ready(
        actor_forward(big_state, params, block_batch=128, use_bf16=True)
    )
    assert jnp.allclose(out_bf16, ref_forward(big_state, params),
                        atol=2e-2, rtol=2e-2)

    print("KERNEL_OK")
</pallas_src>

<mosaic_0001>
module attributes {stable_mosaic.version = 11 : i64} {
  func.func @actor_kernel(%arg0: i32, %arg1: memref<8x8xf32, #tpu.memory_space<vmem>>, %arg2: memref<8x32xf32, #tpu.memory_space<vmem>>, %arg3: memref<1x32xf32, #tpu.memory_space<vmem>>, %arg4: memref<32x32xf32, #tpu.memory_space<vmem>>, %arg5: memref<1x32xf32, #tpu.memory_space<vmem>>, %arg6: memref<32x4xf32, #tpu.memory_space<vmem>>, %arg7: memref<1x4xf32, #tpu.memory_space<vmem>>, %arg8: memref<8x4xf32, #tpu.memory_space<vmem>>) attributes {dimension_semantics = [#tpu.dimension_semantics<parallel>], iteration_bounds = array<i64: 1>, scalar_prefetch = 0 : i64, scratch_operands = 0 : i64, tpu.core_type = #tpu.core_type<tc>, window_params = [{transform_indices = @transform_0, window_bounds = array<i64: 8, 8>}, {pipeline_mode = #tpu.pipeline_mode<synchronous>, transform_indices = @transform_1, window_bounds = array<i64: 8, 32>}, {pipeline_mode = #tpu.pipeline_mode<synchronous>, transform_indices = @transform_2, window_bounds = array<i64: 1, 32>}, {pipeline_mode = #tpu.pipeline_mode<synchronous>, transform_indices = @transform_3, window_bounds = array<i64: 32, 32>}, {pipeline_mode = #tpu.pipeline_mode<synchronous>, transform_indices = @transform_4, window_bounds = array<i64: 1, 32>}, {pipeline_mode = #tpu.pipeline_mode<synchronous>, transform_indices = @transform_5, window_bounds = array<i64: 32, 4>}, {pipeline_mode = #tpu.pipeline_mode<synchronous>, transform_indices = @transform_6, window_bounds = array<i64: 1, 4>}, {transform_indices = @transform_7, window_bounds = array<i64: 8, 4>}]} {
    %c0 = arith.constant 0 : index
    %c0_0 = arith.constant 0 : index
    %0 = vector.load %arg1[%c0, %c0_0] : memref<8x8xf32, #tpu.memory_space<vmem>>, vector<8x8xf32>
    %c0_1 = arith.constant 0 : index
    %c0_2 = arith.constant 0 : index
    %1 = vector.load %arg2[%c0_1, %c0_2] : memref<8x32xf32, #tpu.memory_space<vmem>>, vector<8x32xf32>
    %cst = arith.constant dense<0.000000e+00> : vector<8x32xf32>
    %2 = tpu.matmul %0, %1, %cst {dimension_numbers = #tpu.dot_dimension_numbers<[1], [0], [0], [1], [0, 0, 1, 1], [], []>} : vector<8x8xf32>, vector<8x32xf32>, vector<8x32xf32> -> vector<8x32xf32>
    %c0_3 = arith.constant 0 : index
    %c0_4 = arith.constant 0 : index
    %3 = vector.load %arg3[%c0_3, %c0_4] : memref<1x32xf32, #tpu.memory_space<vmem>>, vector<1x32xf32>
    %4 = vector.broadcast %3 : vector<1x32xf32> to vector<8x32xf32>
    %5 = arith.addf %2, %4 : vector<8x32xf32>
    %6 = math.tanh %5 : vector<8x32xf32>
    %c0_5 = arith.constant 0 : index
    %c0_6 = arith.constant 0 : index
    %7 = vector.load %arg4[%c0_5, %c0_6] : memref<32x32xf32, #tpu.memory_space<vmem>>, vector<32x32xf32>
    %cst_7 = arith.constant dense<0.000000e+00> : vector<8x32xf32>
    %8 = tpu.matmul %6, %7, %cst_7 {dimension_numbers = #tpu.dot_dimension_numbers<[1], [0], [0], [1], [0, 0, 1, 1], [], []>} : vector<8x32xf32>, vector<32x32xf32>, vector<8x32xf32> -> vector<8x32xf32>
    %c0_8 = arith.constant 0 : index
    %c0_9 = arith.constant 0 : index
    %9 = vector.load %arg5[%c0_8, %c0_9] : memref<1x32xf32, #tpu.memory_space<vmem>>, vector<1x32xf32>
    %10 = vector.broadcast %9 : vector<1x32xf32> to vector<8x32xf32>
    %11 = arith.addf %8, %10 : vector<8x32xf32>
    %12 = math.tanh %11 : vector<8x32xf32>
    %c0_10 = arith.constant 0 : index
    %c0_11 = arith.constant 0 : index
    %13 = vector.load %arg6[%c0_10, %c0_11] : memref<32x4xf32, #tpu.memory_space<vmem>>, vector<32x4xf32>
    %cst_12 = arith.constant dense<0.000000e+00> : vector<8x4xf32>
    %14 = tpu.matmul %12, %13, %cst_12 {dimension_numbers = #tpu.dot_dimension_numbers<[1], [0], [0], [1], [0, 0, 1, 1], [], []>} : vector<8x32xf32>, vector<32x4xf32>, vector<8x4xf32> -> vector<8x4xf32>
    %c0_13 = arith.constant 0 : index
    %c0_14 = arith.constant 0 : index
    %15 = vector.load %arg7[%c0_13, %c0_14] : memref<1x4xf32, #tpu.memory_space<vmem>>, vector<1x4xf32>
    %16 = vector.broadcast %15 : vector<1x4xf32> to vector<8x4xf32>
    %17 = arith.addf %14, %16 : vector<8x4xf32>
    %18 = arith.negf %17 : vector<8x4xf32>
    %19 = math.exp %18 : vector<8x4xf32>
    %cst_15 = arith.constant 1.000000e+00 : f32
    %20 = vector.broadcast %cst_15 : f32 to vector<8x4xf32>
    %21 = arith.addf %20, %19 : vector<8x4xf32>
    %22 = arith.divf %20, %21 : vector<8x4xf32>
    %c0_16 = arith.constant 0 : index
    %c0_17 = arith.constant 0 : index
    %23 = vector.load %arg8[%c0_16, %c0_17] : memref<8x4xf32, #tpu.memory_space<vmem>>, vector<8x4xf32>
    tpu.vector_store %arg8[%c0_16, %c0_17], %22 {strides = array<i32>} : memref<8x4xf32, #tpu.memory_space<vmem>>, vector<8x4xf32>,
    return
  }
  func.func @transform_0(%arg0: i32) -> (i32, i32) {
    %c0_i32 = arith.constant 0 : i32
    %c0_i32_0 = arith.constant 0 : i32
    return %arg0, %c0_i32 : i32, i32
  }
  func.func @transform_1(%arg0: i32) -> (i32, i32) {
    %c0_i32 = arith.constant 0 : i32
    %c0_i32_0 = arith.constant 0 : i32
    %c0_i32_1 = arith.constant 0 : i32
    return %c0_i32, %c0_i32_0 : i32, i32
  }
  func.func @transform_2(%arg0: i32) -> (i32, i32) {
    %c0_i32 = arith.constant 0 : i32
    %c0_i32_0 = arith.constant 0 : i32
    %c0_i32_1 = arith.constant 0 : i32
    return %c0_i32, %c0_i32_0 : i32, i32
  }
  func.func @transform_3(%arg0: i32) -> (i32, i32) {
    %c0_i32 = arith.constant 0 : i32
    %c0_i32_0 = arith.constant 0 : i32
    %c0_i32_1 = arith.constant 0 : i32
    return %c0_i32, %c0_i32_0 : i32, i32
  }
  func.func @transform_4(%arg0: i32) -> (i32, i32) {
    %c0_i32 = arith.constant 0 : i32
    %c0_i32_0 = arith.constant 0 : i32
    %c0_i32_1 = arith.constant 0 : i32
    return %c0_i32, %c0_i32_0 : i32, i32
  }
  func.func @transform_5(%arg0: i32) -> (i32, i32) {
    %c0_i32 = arith.constant 0 : i32
    %c0_i32_0 = arith.constant 0 : i32
    %c0_i32_1 = arith.constant 0 : i32
    return %c0_i32, %c0_i32_0 : i32, i32
  }
  func.func @transform_6(%arg0: i32) -> (i32, i32) {
    %c0_i32 = arith.constant 0 : i32
    %c0_i32_0 = arith.constant 0 : i32
    %c0_i32_1 = arith.constant 0 : i32
    return %c0_i32, %c0_i32_0 : i32, i32
  }
  func.func @transform_7(%arg0: i32) -> (i32, i32) {
    %c0_i32 = arith.constant 0 : i32
    %c0_i32_0 = arith.constant 0 : i32
    return %arg0, %c0_i32 : i32, i32
  }
}

</mosaic_0001>

<bundles_post_ra>
// kernel: tpu_custom_call.1
= control target key start
LH: loop header
LB: loop body
LE: loop exit
PB: predicated region body
PF: predicated region fallthrough
CT: control target
= control target key end

     0   :  { %12 = vsyncpa [#allocation3], 0  ;;  %s399_s24 = smov [#allocation2]   ;;  %s496_s0 = inlined_call_operand.vmem [shape: f32[8,8], index: 0, kind: input, shape index: {}]   ;;  %s497_s1 = inlined_call_operand.hbm [shape: f32[8,32], index: 1, kind: input, shape index: {}]   ;;  %s498_s2 = inlined_call_operand.vmem [shape: f32[1,32], index: 2, kind: input, shape index: {}]   ;;  %s499_s3 = inlined_call_operand.vmem [shape: f32[32,32], index: 3, kind: input, shape index: {}]   ;;  %s500_s4 = inlined_call_operand.vmem [shape: f32[1,32], index: 4, kind: input, shape index: {}]   ;;  %s501_s5 = inlined_call_operand.vmem [shape: f32[32,4], index: 5, kind: input, shape index: {}]   ;;  %s502_s6 = inlined_call_operand.vmem [shape: f32[1,4], index: 6, kind: input, shape index: {}]   ;;  %s503_s7 = inlined_call_operand.vmem [shape: f32[8,4], index: 7, kind: output, shape index: {}]  }
   0x1   :  { %s21_s25 = sshll.u32 %s399_s24, 4  ;;  %s375_s28 = scalar_lea.hbm %s497_s1, 128  ;;  %s22_s25 = int_to_ptr.vmem [resolvable:$true] %s21_s25 }
   0x2   :  { %p376_p0 = scmp.ne.s32.totalorder %s497_s1, %s375_s28  ;;  %p379_p1 = scmp.lt.u32.totalorder %s375_s28, %s497_s1 }
   0x4   :  { %p381_p2 = pnand %p379_p1, %p376_p0 }
   0x6   :  { %384 = shalt.err (!%p381_p2)
}
   0x7   :  { %s385_s10 = scalar_lea.vmem %s22_s25, 128  ;;  %p390_p4 = scmp.lt.s32.totalorder %s22_s25, %s22_s25 }
   0x8   :  { %p386_p3 = scmp.ne.s32.totalorder %s22_s25, %s385_s10  ;;  %p391_p5 = scmp.lt.s32.totalorder %s385_s10, %s385_s10 }
   0xa   :  { %p392_p6 = por %p391_p5, %p390_p4 }
   0xc   :  { %p393_p7 = pnand %p392_p6, %p386_p3 }
   0xe   :  { %396 = shalt.err (!%p393_p7)
}
   0xf   :  { %24 = dma.hbm_to_vmem [thread:$0]  %s497_s1, 128, %s22_s25, [#allocation3]  }
  0x10   :  { %397 = dma.done.wait [#allocation3], 128  }
  0x11   :  { %398 = vsyncadd [#allocation3], 4294967168  ;;  %v400_v0 = vmov 0.0   ;;  %vm401_vm0 = vmmov 0   ;;  %vm47_vm1 = vcmask 64512   ;;  %v39_v1 = vld [vmem:[#allocation2] sm:$0xff] }
  0x12   :  { %324 = vmatprep.subr.mxu0 %v400_v0  ;;  %326 = vmatprep.mubr.msk.f32.mxu0 %vm401_vm0, %v400_v0  ;;  %v38_v2 = vld [vmem:[%s496_s0] sm:$0xff]  ;;  %v123_v4 = vld [vmem:[%s499_s3 + $0x8] sm:$0xff]  ;;  %v124_v5 = vld [vmem:[%s499_s3 + $0x10] sm:$0xff]  ;;  %v402_v6 = vmov 0.0|0.0   ;;  %vm133_vm2 = vcmask 261120   ;;  %vm298_vm3 = vcmask 31744  }
  0x13   :  { %337 = vmatprep.mubr.msk.f32.mxu1 %vm401_vm0, %v400_v0  ;;  %325 = vmatpush3.msra.mxu0 %v39_v1  ;;  %v122_v3 = vld [vmem:[%s499_s3] sm:$0xff]  ;;  %v125_v8 = vld [vmem:[%s499_s3 + $0x18] sm:$0xff]  ;;  %v209_v16 = vld [vmem:[%s501_s5 + $0x8] sm:$0xff] }
  0x14   :  { %327 = vmatmul.mubr.msk.f32.vlgmr.msra.gmra.mrb[0].mxu0 %vm47_vm1, %v38_v2  ;;  %351 = vmatprep.subr.bf16.mxu1 %v402_v6  ;;  %v352_v7 = vpack.c.bf16 %v123_v4, %v122_v3  ;;  %v355_v9 = vpack.c.bf16 %v125_v8, %v124_v5  ;;  %v305_v10 = vld [vmem:[%s498_s2] ss:$0 sm:$0xff]  ;;  %v210_v17 = vld [vmem:[%s501_s5 + $0x10] sm:$0xff]  ;;  %v211_v19 = vld [vmem:[%s501_s5 + $0x18] sm:$0xff] }
  0x15   :  { %348 = vmatprep.mubr.msk.f32.mxu0 %vm401_vm0, %v400_v0  ;;  %357 = vmatprep.subr.bf16.mxu0 %v402_v6  ;;  %v208_v15 = vld [vmem:[%s501_s5] sm:$0xff]  ;;  %v361_v20 = vpack.c.bf16 %v211_v19, %v210_v17 }
  0x16   :  { %353 = vmatpush3.bf16.msra.mxu1 %v352_v7  ;;  %v358_v18 = vpack.c.bf16 %v209_v16, %v208_v15  ;;  %v307_v21 = vld [vmem:[%s500_s4] ss:$0 sm:$0xff] }
  0x17   :  { %354 = vmatprep.subr.bf16.mxu1 %v402_v6  ;;  %v309_v26 = vld [vmem:[%s502_s6] ss:$0 sm:$0xff] }
  0x18   :  { %359 = vmatpush3.bf16.msra.mxu0 %v358_v18 }
  0x19   :  { %360 = vmatprep.subr.bf16.mxu0 %v402_v6 }
  0x1a   :  { %356 = vmatpush3.bf16.msra.mxu1 %v355_v9 }
  0x1c   :  { %362 = vmatpush3.bf16.msra.mxu0 %v361_v20 }
  0xe7   :  { %v117_v11 = vpop.f32.mrb[0].mxu0 }
  0xe8   :  { %v118_v12 = vadd.f32 %v305_v10, %v117_v11  ;;  %v328_v13 = vpop.f32.mrb[1].mxu0 }
  0xea   :  { %367 = vtanh.f32 %v118_v12 }
  0xf4   :  { %v368_v14 = vpop.eup %367 }
  0xf5   :  { %338 = vmatmul.mubr.msk.f32.vlgmr.msra.gmra.mrb[0].mxu1 %vm133_vm2, %v368_v14 }
 0x1c8   :  { %v203_v22 = vpop.f32.mrb[0].mxu1 }
 0x1c9   :  { %v204_v23 = vadd.f32 %v307_v21, %v203_v22  ;;  %v339_v24 = vpop.f32.mrb[1].mxu1 }
 0x1cb   :  { %369 = vtanh.f32 %v204_v23 }
 0x1d5   :  { %v370_v25 = vpop.eup %369 }
 0x1d6   :  { %349 = vmatmul.mubr.msk.f32.vlgmr.msra.gmra.mrb[2].mxu0 %vm133_vm2, %v370_v25 }
 0x2a9   :  { %v288_v27 = vpop.f32.mrb[2].mxu0 }
 0x2aa   :  { %v289_v28 = vadd.f32 %v309_v26, %v288_v27  ;;  %v350_v29 = vpop.f32.mrb[3].mxu0 }
 0x2ac   :  { %v311_v30 = vmul.f32 -1.442695, %v289_v28 }
 0x2ae   :  { %371 = vpow2.f32 %v311_v30 }
 0x2b8   :  { %v372_v31 = vpop.eup %371 }
 0x2b9   :  { %v295_v32 = vadd.f32 1.0, %v372_v31 }
 0x2bb   :  { %373 = vrcp.f32 %v295_v32 }
 0x2c5   :  { %v374_v33 = vpop.eup %373 }
 0x2c6   :  { %299 = vst.msk [vmem:[%s503_s7] sm:$0xff] %vm298_vm3, %v374_v33 }
 0x2c7   :  { %304 = vsyncpa [#allocation3], 1 }

</bundles_post_ra>
